<compile_context>
chip_gen: v6e
topology: v6e:2x2x1
jax: 0.10.0
libtpu: 0.0.40
codegen_flags: <defaults>
</compile_context>

<pallas_src>
from functools import partial

import jax
import jax.numpy as jnp
from jax.experimental import pallas as pl
from jax.experimental.pallas import tpu as pltpu

_MIB = 1024 * 1024


def _round_up(x: int, m: int) -> int:
    return ((x + m - 1) // m) * m


def _vmem_capacity_bytes() -> int:
    """Physical VMEM per core; falls back to 128 MiB if the query fails."""
    try:
        info = pltpu.get_tpu_info()
        cap = getattr(info, "vmem_capacity_bytes", None)
        if cap:
            return int(cap)
    except Exception:
        pass
    return 128 * _MIB


def fused_gcn_kernel(*refs, depth: int, layer_dims, row_blk: int):
    """Fused stack of GCN layers; adjacency + activations stay in VMEM.

    refs = (adj, h, w_0, b_0, ..., w_{d-1}, b_{d-1}, out, act_a, act_b)
      adj   : bf16 [Np, Np]    symmetrically-normalized adjacency (padded)
      h     : bf16 [Np, F0p]   input node features (padded)
      w_i   : bf16 [Fip, Fop]  layer weights (padded)
      b_i   : f32  [1,  Fop]   layer bias (padded)
      out   : bf16 [Np, FLp]   final activation
      act_* : bf16 [Np, Fmaxp] ping-pong scratch for intermediate activations
    """
    adj_ref = refs[0]
    h_ref = refs[1]
    wb_refs = refs[2 : 2 + 2 * depth]
    out_ref = refs[2 + 2 * depth]
    act_refs = refs[3 + 2 * depth :]

    n_pad = adj_ref.shape[0]
    n_blocks = n_pad // row_blk

    src_ref = h_ref
    for idx in range(depth):
        f_in, f_out = layer_dims[idx]
        w = wb_refs[2 * idx][...]            # bf16 [f_in, f_out]
        b = wb_refs[2 * idx + 1][...]        # f32  [1, f_out]
        last = idx == depth - 1
        dst_ref = out_ref if last else act_refs[idx % 2]

        h = src_ref[:, :f_in]                # bf16 [Np, f_in], resident

        if f_out > f_in:
            # Expanding layer: aggregate first (dominant term N^2 * f_in).
            hw = None
        else:
            # Contracting / equal layer: transform first (N^2 * f_out), the
            # [Np, f_out] HW product stays resident across the row loop.
            hw = jnp.dot(h, w, preferred_element_type=jnp.float32)
            hw = hw.astype(jnp.bfloat16)

        # Row-blocked aggregation: bounds intermediates to one block and lets
        # the +b / ReLU / cast epilogue of block r overlap the MXU work of
        # block r+1 (static unrolled loop -> fully visible to the scheduler).
        for r in range(n_blocks):
            rows = slice(r * row_blk, (r + 1) * row_blk)
            a_blk = adj_ref[rows, :]
            if hw is None:
                ah = jnp.dot(a_blk, h, preferred_element_type=jnp.float32)
                acc = jnp.dot(ah.astype(jnp.bfloat16), w,
                              preferred_element_type=jnp.float32)
            else:
                acc = jnp.dot(a_blk, hw, preferred_element_type=jnp.float32)
            acc = acc + b                    # f32 epilogue
            if not last:
                acc = jnp.maximum(acc, 0.0)  # ReLU between layers only
            dst_ref[rows, :f_out] = acc.astype(dst_ref.dtype)

        src_ref = dst_ref


def sequential_forward(adj_norm, h, params):
    """Pad to TPU-friendly shapes, run the fused kernel once, slice back."""
    depth = len(params)
    n = h.shape[0]
    out_features = params[-1][0].shape[1]

    # Logical and padded per-layer widths (features padded to lane width 128).
    dims = [params[0][0].shape[0]] + [w.shape[1] for (w, _) in params]
    dims_pad = [_round_up(d, 128) for d in dims]

    # N is both the lane dim of adj and the MXU contraction dim of A@(HW):
    # pad to 128, and to 256 for larger graphs (2x256 MXU on v6e/v7x).
    n_pad = _round_up(max(n, 128), 128)
    if n_pad > 128:
        n_pad = _round_up(n_pad, 256)
    row_blk = min(n_pad, 256)
    assert n_pad % row_blk == 0

    # Zero padding: padded adjacency rows/cols are zero, so padded node rows
    # (which become `relu(b)` after layer 1) never contaminate real rows, and
    # the output is sliced back to [:n].  Padded weight/bias columns are zero,
    # so padded feature columns stay exactly zero through every layer.
    adj_p = jnp.zeros((n_pad, n_pad), jnp.bfloat16)
    adj_p = adj_p.at[:n, :n].set(adj_norm.astype(jnp.bfloat16))
    h_p = jnp.zeros((n_pad, dims_pad[0]), jnp.bfloat16)
    h_p = h_p.at[:n, : dims[0]].set(h.astype(jnp.bfloat16))

    wb_operands = []
    layer_dims = []
    for i, (w, b) in enumerate(params):
        f_in, f_out = dims[i], dims[i + 1]
        f_in_p, f_out_p = dims_pad[i], dims_pad[i + 1]
        w_p = jnp.zeros((f_in_p, f_out_p), jnp.bfloat16)
        w_p = w_p.at[:f_in, :f_out].set(w.astype(jnp.bfloat16))
        b_p = jnp.zeros((1, f_out_p), jnp.float32)
        b_p = b_p.at[:, :f_out].set(b.astype(jnp.float32))
        wb_operands += [w_p, b_p]
        layer_dims.append((f_in_p, f_out_p))

    operands = [adj_p, h_p] + wb_operands
    out_shape = jax.ShapeDtypeStruct((n_pad, dims_pad[-1]), jnp.bfloat16)

    # Ping-pong scratch for intermediate activations (bf16, max hidden width).
    scratch_w = max(dims_pad[1:])
    scratch_shapes = [
        pltpu.VMEM((n_pad, scratch_w), jnp.bfloat16),
        pltpu.VMEM((n_pad, scratch_w), jnp.bfloat16),
    ]

    # VMEM budget: single-buffered operands (no grid -> no double buffering)
    # + output + scratch + per-row-block in-flight intermediates, capped by
    # the generation's physical VMEM minus headroom (v7x: 64 MiB parts).
    operand_bytes = sum(int(x.size) * x.dtype.itemsize for x in operands)
    out_bytes = n_pad * dims_pad[-1] * 2
    scratch_bytes = 2 * n_pad * scratch_w * 2
    max_f = max(dims_pad)
    inter_bytes = n_pad * max_f * 2 + 3 * row_blk * max_f * 4  # resident HW/h + block temps
    working = operand_bytes + out_bytes + scratch_bytes + inter_bytes

    cap = _vmem_capacity_bytes()
    if cap > 64 * _MIB:
        usable = min(cap - 16 * _MIB, 100 * _MIB)   # v5e / v6e (128 MiB parts)
    else:
        usable = cap - 8 * _MIB                     # v7x (64 MiB parts)
    vmem_limit = int(min(usable, max(working + 4 * _MIB, 32 * _MIB)))

    vmem = pltpu.MemorySpace.VMEM
    in_specs = [pl.BlockSpec(memory_space=vmem) for _ in operands]
    out_specs = pl.BlockSpec(memory_space=vmem)

    out_p = pl.pallas_call(
        partial(
            fused_gcn_kernel,
            depth=depth,
            layer_dims=tuple(layer_dims),
            row_blk=row_blk,
        ),
        out_shape=out_shape,
        in_specs=in_specs,
        out_specs=out_specs,
        scratch_shapes=scratch_shapes,
        compiler_params=pltpu.CompilerParams(vmem_limit_bytes=vmem_limit),
    )(*operands)

    return out_p[:n, :out_features]


def init_sequential_params(key, in_features, hidden_features, out_features, depth):
    """Deterministic Glorot-uniform weights + zero biases, one pair per layer."""
    params = []
    for idx in range(depth):
        f_in = in_features if idx == 0 else hidden_features
        f_out = hidden_features if idx < depth - 1 else out_features
        key, wkey = jax.random.split(key)
        limit = jnp.sqrt(6.0 / (f_in + f_out))
        w = jax.random.uniform(
            wkey, (f_in, f_out), dtype=jnp.float32, minval=-limit, maxval=limit
        )
        b = jnp.zeros((1, f_out), dtype=jnp.float32)
        params.append((w, b))
    return params


def normalized_adjacency(src, dst, num_nodes):
    """Dense symmetrically-normalized adjacency Ahat = D^-1/2 A D^-1/2.

    Graph treated as undirected (edges in both directions); zero-degree nodes
    get zero rows/cols — matches DGL GraphConv(norm='both').
    """
    a = jnp.zeros((num_nodes, num_nodes), dtype=jnp.float32)
    a = a.at[dst, src].set(1.0)
    a = a.at[src, dst].set(1.0)
    deg = a.sum(axis=1)
    d_inv_sqrt = jnp.where(deg > 0, 1.0 / jnp.sqrt(jnp.maximum(deg, 1e-12)), 0.0)
    return a * d_inv_sqrt[:, None] * d_inv_sqrt[None, :]


if __name__ == "__main__":
    key = jax.random.PRNGKey(0)

    # Small synthetic graph: 8 nodes on a ring plus a couple of chords.
    num_nodes = 8
    src = jnp.array([0, 1, 2, 3, 4, 5, 6, 7, 0, 2], dtype=jnp.int32)
    dst = jnp.array([1, 2, 3, 4, 5, 6, 7, 0, 4, 6], dtype=jnp.int32)
    adj_norm = normalized_adjacency(src, dst, num_nodes)

    in_features, hidden_features, out_features, depth = 16, 32, 16, 3

    key, hkey = jax.random.split(key)
    h = jax.random.normal(hkey, (num_nodes, in_features), dtype=jnp.float32)

    params = init_sequential_params(
        key, in_features, hidden_features, out_features, depth
    )

    out = sequential_forward(adj_norm, h, params)
    out = jax.block_until_ready(out)

    assert out.shape == (num_nodes, out_features), out.shape
    out_f32 = out.astype(jnp.float32)
    assert jnp.all(jnp.isfinite(out_f32))

    # Sanity check against a pure-JAX f32 reference (bf16 MXU inputs / bf16
    # activations -> loose tolerance).
    ref = h
    for idx, (w, b) in enumerate(params):
        ref = adj_norm @ (ref @ w) + b
        if idx < depth - 1:
            ref = jnp.maximum(ref, 0.0)
    err = float(jnp.max(jnp.abs(out_f32 - ref)) / (jnp.max(jnp.abs(ref)) + 1e-6))
    assert err < 5e-2, f"relative error too large: {err}"

    print("KERNEL_OK")
</pallas_src>

<mosaic_0001>
module attributes {stable_mosaic.version = 11 : i64} {
  func.func @fused_gcn_kernel(%arg0: memref<128x128xbf16, #tpu.memory_space<vmem>>, %arg1: memref<128x128xbf16, #tpu.memory_space<vmem>>, %arg2: memref<128x128xbf16, #tpu.memory_space<vmem>>, %arg3: memref<1x128xf32, #tpu.memory_space<vmem>>, %arg4: memref<128x128xbf16, #tpu.memory_space<vmem>>, %arg5: memref<1x128xf32, #tpu.memory_space<vmem>>, %arg6: memref<128x128xbf16, #tpu.memory_space<vmem>>, %arg7: memref<1x128xf32, #tpu.memory_space<vmem>>, %arg8: memref<128x128xbf16, #tpu.memory_space<vmem>>, %arg9: memref<128x128xbf16, #tpu.memory_space<vmem>>, %arg10: memref<128x128xbf16, #tpu.memory_space<vmem>>) attributes {dimension_semantics = [], scalar_prefetch = 0 : i64, scratch_operands = 2 : i64, tpu.core_type = #tpu.core_type<tc>} {
    %c0 = arith.constant 0 : index
    %c0_0 = arith.constant 0 : index
    %0 = vector.load %arg2[%c0, %c0_0] : memref<128x128xbf16, #tpu.memory_space<vmem>>, vector<128x128xbf16>
    %c0_1 = arith.constant 0 : index
    %c0_2 = arith.constant 0 : index
    %1 = vector.load %arg3[%c0_1, %c0_2] : memref<1x128xf32, #tpu.memory_space<vmem>>, vector<1x128xf32>
    %c0_3 = arith.constant 0 : index
    %c0_4 = arith.constant 0 : index
    %2 = vector.load %arg1[%c0_3, %c0_4] : memref<128x128xbf16, #tpu.memory_space<vmem>>, vector<128x128xbf16>
    %cst = arith.constant dense<0.000000e+00> : vector<128x128xf32>
    %3 = tpu.matmul %2, %0, %cst {dimension_numbers = #tpu.dot_dimension_numbers<[1], [0], [0], [1], [0, 0, 1, 1], [], []>} : vector<128x128xbf16>, vector<128x128xbf16>, vector<128x128xf32> -> vector<128x128xf32>
    %4 = arith.truncf %3 : vector<128x128xf32> to vector<128x128xbf16>
    %c0_5 = arith.constant 0 : index
    %c0_6 = arith.constant 0 : index
    %5 = vector.load %arg0[%c0_5, %c0_6] : memref<128x128xbf16, #tpu.memory_space<vmem>>, vector<128x128xbf16>
    %cst_7 = arith.constant dense<0.000000e+00> : vector<128x128xf32>
    %6 = tpu.matmul %5, %4, %cst_7 {dimension_numbers = #tpu.dot_dimension_numbers<[1], [0], [0], [1], [0, 0, 1, 1], [], []>} : vector<128x128xbf16>, vector<128x128xbf16>, vector<128x128xf32> -> vector<128x128xf32>
    %7 = vector.broadcast %1 : vector<1x128xf32> to vector<128x128xf32>
    %8 = arith.addf %6, %7 : vector<128x128xf32>
    %cst_8 = arith.constant 0.000000e+00 : f32
    %9 = vector.broadcast %cst_8 : f32 to vector<128x128xf32>
    %10 = arith.maximumf %8, %9 : vector<128x128xf32>
    %11 = arith.truncf %10 : vector<128x128xf32> to vector<128x128xbf16>
    %c0_9 = arith.constant 0 : index
    %c0_10 = arith.constant 0 : index
    %12 = vector.load %arg9[%c0_9, %c0_10] : memref<128x128xbf16, #tpu.memory_space<vmem>>, vector<128x128xbf16>
    tpu.vector_store %arg9[%c0_9, %c0_10], %11 {strides = array<i32>} : memref<128x128xbf16, #tpu.memory_space<vmem>>, vector<128x128xbf16>,
    %c0_11 = arith.constant 0 : index
    %c0_12 = arith.constant 0 : index
    %13 = vector.load %arg4[%c0_11, %c0_12] : memref<128x128xbf16, #tpu.memory_space<vmem>>, vector<128x128xbf16>
    %c0_13 = arith.constant 0 : index
    %c0_14 = arith.constant 0 : index
    %14 = vector.load %arg5[%c0_13, %c0_14] : memref<1x128xf32, #tpu.memory_space<vmem>>, vector<1x128xf32>
    %c0_15 = arith.constant 0 : index
    %c0_16 = arith.constant 0 : index
    %15 = vector.load %arg9[%c0_15, %c0_16] : memref<128x128xbf16, #tpu.memory_space<vmem>>, vector<128x128xbf16>
    %cst_17 = arith.constant dense<0.000000e+00> : vector<128x128xf32>
    %16 = tpu.matmul %15, %13, %cst_17 {dimension_numbers = #tpu.dot_dimension_numbers<[1], [0], [0], [1], [0, 0, 1, 1], [], []>} : vector<128x128xbf16>, vector<128x128xbf16>, vector<128x128xf32> -> vector<128x128xf32>
    %17 = arith.truncf %16 : vector<128x128xf32> to vector<128x128xbf16>
    %c0_18 = arith.constant 0 : index
    %c0_19 = arith.constant 0 : index
    %18 = vector.load %arg0[%c0_18, %c0_19] : memref<128x128xbf16, #tpu.memory_space<vmem>>, vector<128x128xbf16>
    %cst_20 = arith.constant dense<0.000000e+00> : vector<128x128xf32>
    %19 = tpu.matmul %18, %17, %cst_20 {dimension_numbers = #tpu.dot_dimension_numbers<[1], [0], [0], [1], [0, 0, 1, 1], [], []>} : vector<128x128xbf16>, vector<128x128xbf16>, vector<128x128xf32> -> vector<128x128xf32>
    %20 = vector.broadcast %14 : vector<1x128xf32> to vector<128x128xf32>
    %21 = arith.addf %19, %20 : vector<128x128xf32>
    %cst_21 = arith.constant 0.000000e+00 : f32
    %22 = vector.broadcast %cst_21 : f32 to vector<128x128xf32>
    %23 = arith.maximumf %21, %22 : vector<128x128xf32>
    %24 = arith.truncf %23 : vector<128x128xf32> to vector<128x128xbf16>
    %c0_22 = arith.constant 0 : index
    %c0_23 = arith.constant 0 : index
    %25 = vector.load %arg10[%c0_22, %c0_23] : memref<128x128xbf16, #tpu.memory_space<vmem>>, vector<128x128xbf16>
    tpu.vector_store %arg10[%c0_22, %c0_23], %24 {strides = array<i32>} : memref<128x128xbf16, #tpu.memory_space<vmem>>, vector<128x128xbf16>,
    %c0_24 = arith.constant 0 : index
    %c0_25 = arith.constant 0 : index
    %26 = vector.load %arg6[%c0_24, %c0_25] : memref<128x128xbf16, #tpu.memory_space<vmem>>, vector<128x128xbf16>
    %c0_26 = arith.constant 0 : index
    %c0_27 = arith.constant 0 : index
    %27 = vector.load %arg7[%c0_26, %c0_27] : memref<1x128xf32, #tpu.memory_space<vmem>>, vector<1x128xf32>
    %c0_28 = arith.constant 0 : index
    %c0_29 = arith.constant 0 : index
    %28 = vector.load %arg10[%c0_28, %c0_29] : memref<128x128xbf16, #tpu.memory_space<vmem>>, vector<128x128xbf16>
    %cst_30 = arith.constant dense<0.000000e+00> : vector<128x128xf32>
    %29 = tpu.matmul %28, %26, %cst_30 {dimension_numbers = #tpu.dot_dimension_numbers<[1], [0], [0], [1], [0, 0, 1, 1], [], []>} : vector<128x128xbf16>, vector<128x128xbf16>, vector<128x128xf32> -> vector<128x128xf32>
    %30 = arith.truncf %29 : vector<128x128xf32> to vector<128x128xbf16>
    %c0_31 = arith.constant 0 : index
    %c0_32 = arith.constant 0 : index
    %31 = vector.load %arg0[%c0_31, %c0_32] : memref<128x128xbf16, #tpu.memory_space<vmem>>, vector<128x128xbf16>
    %cst_33 = arith.constant dense<0.000000e+00> : vector<128x128xf32>
    %32 = tpu.matmul %31, %30, %cst_33 {dimension_numbers = #tpu.dot_dimension_numbers<[1], [0], [0], [1], [0, 0, 1, 1], [], []>} : vector<128x128xbf16>, vector<128x128xbf16>, vector<128x128xf32> -> vector<128x128xf32>
    %33 = vector.broadcast %27 : vector<1x128xf32> to vector<128x128xf32>
    %34 = arith.addf %32, %33 : vector<128x128xf32>
    %35 = arith.truncf %34 : vector<128x128xf32> to vector<128x128xbf16>
    %c0_34 = arith.constant 0 : index
    %c0_35 = arith.constant 0 : index
    %36 = vector.load %arg8[%c0_34, %c0_35] : memref<128x128xbf16, #tpu.memory_space<vmem>>, vector<128x128xbf16>
    tpu.vector_store %arg8[%c0_34, %c0_35], %35 {strides = array<i32>} : memref<128x128xbf16, #tpu.memory_space<vmem>>, vector<128x128xbf16>,
    return
  }
}

</mosaic_0001>

<bundles_post_ra>
// kernel: tpu_custom_call.1
= control target key start
LH: loop header
LB: loop body
LE: loop exit
PB: predicated region body
PF: predicated region fallthrough
CT: control target
= control target key end

     0   :  { %13 = vsyncpa [#allocation5], 0  ;;  %s2535_s0 = inlined_call_operand.hbm [shape: bf16[128,128], index: 0, kind: input, shape index: {}]   ;;  %s2536_s1 = inlined_call_operand.hbm [shape: bf16[128,128], index: 1, kind: input, shape index: {}]   ;;  %s2537_s2 = inlined_call_operand.hbm [shape: bf16[128,128], index: 2, kind: input, shape index: {}]   ;;  %s2538_s3 = inlined_call_operand.vmem [shape: f32[1,128], index: 3, kind: input, shape index: {}]   ;;  %s2539_s4 = inlined_call_operand.hbm [shape: bf16[128,128], index: 4, kind: input, shape index: {}]   ;;  %s2540_s5 = inlined_call_operand.vmem [shape: f32[1,128], index: 5, kind: input, shape index: {}]   ;;  %s2541_s6 = inlined_call_operand.hbm [shape: bf16[128,128], index: 6, kind: input, shape index: {}]   ;;  %s2542_s7 = inlined_call_operand.vmem [shape: f32[1,128], index: 7, kind: input, shape index: {}]   ;;  %s2543_s8 = inlined_call_operand.hbm [shape: bf16[128,128], index: 8, kind: output, shape index: {}]  }
   0x1   :  { %14 = vsyncpa [#allocation8], 0 }
   0x2   :  { %15 = vsyncpa [#allocation11], 0 }
   0x3   :  { %16 = vsyncpa [#allocation6], 0  ;;  %s2401_s27 = smov [#allocation7]   ;;  %s2402_s29 = smov [#allocation10]  }
   0x4   :  { %s34_s28 = sshll.u32 %s2401_s27, 4  ;;  %s60_s30 = sshll.u32 %s2402_s29, 4  ;;  %s35_s28 = int_to_ptr.vmem [resolvable:$true] %s34_s28  ;;  %s61_s30 = int_to_ptr.vmem [resolvable:$true] %s60_s30 }
   0x5   :  { %s2281_s9 = scalar_lea.vmem %s35_s28, 1024  ;;  %p2286_p1 = scmp.lt.s32.totalorder %s35_s28, %s35_s28 }
   0x6   :  { %p2282_p0 = scmp.ne.s32.totalorder %s35_s28, %s2281_s9  ;;  %p2287_p2 = scmp.lt.s32.totalorder %s2281_s9, %s2281_s9 }
   0x8   :  { %p2288_p3 = por %p2287_p2, %p2286_p1 }
   0xa   :  { %p2289_p4 = pnand %p2288_p3, %p2282_p0 }
   0xc   :  { %2292 = shalt.err (!%p2289_p4)
}
   0xd   :  { %s2403_s10 = smov 64   ;;  %s2404_s11 = smov 4  }
   0xe   :  { %40 = dma.hbm_to_vmem [thread:$0]  %s2536_s1, 1024, %s35_s28, [#allocation8], %s2403_s10, %s2403_s10, %s2404_s11  }
   0xf   :  { %s2301_s14 = scalar_lea.vmem %s61_s30, 1024  ;;  %p2306_p6 = scmp.lt.s32.totalorder %s61_s30, %s61_s30 }
  0x10   :  { %p2302_p5 = scmp.ne.s32.totalorder %s61_s30, %s2301_s14  ;;  %p2307_p7 = scmp.lt.s32.totalorder %s2301_s14, %s2301_s14 }
  0x12   :  { %p2308_p8 = por %p2307_p7, %p2306_p6 }
  0x14   :  { %p2309_p9 = pnand %p2308_p8, %p2302_p5 }
  0x16   :  { %2312 = shalt.err (!%p2309_p9)
}
  0x17   :  { %66 = dma.hbm_to_vmem [thread:$0]  %s2539_s4, 1024, %s61_s30, [#allocation11], %s2403_s10, %s2403_s10, %s2404_s11  }
  0x18   :  { %s2405_s17 = smov [#allocation4]   ;;  %s2406_s19 = smov [#allocation9]  }
  0x19   :  { %s22_s18 = sshll.u32 %s2405_s17, 4  ;;  %s46_s20 = sshll.u32 %s2406_s19, 4  ;;  %s23_s18 = int_to_ptr.vmem [resolvable:$true] %s22_s18  ;;  %s47_s20 = int_to_ptr.vmem [resolvable:$true] %s46_s20 }
  0x1a   :  { %s2321_s1 = scalar_lea.vmem %s23_s18, 1024  ;;  %p2326_p11 = scmp.lt.s32.totalorder %s23_s18, %s23_s18 }
  0x1b   :  { %p2322_p10 = scmp.ne.s32.totalorder %s23_s18, %s2321_s1  ;;  %p2327_p12 = scmp.lt.s32.totalorder %s2321_s1, %s2321_s1 }
  0x1d   :  { %p2328_p13 = por %p2327_p12, %p2326_p11 }
  0x1f   :  { %p2329_p0 = pnand %p2328_p13, %p2322_p10 }
  0x21   :  { %2332 = shalt.err (!%p2329_p0)
}
  0x22   :  { %28 = dma.hbm_to_vmem [thread:$0]  %s2535_s0, 1024, %s23_s18, [#allocation5], %s2403_s10, %s2403_s10, %s2404_s11  }
  0x23   :  { %s2341_s4 = scalar_lea.vmem %s47_s20, 1024  ;;  %p2346_p2 = scmp.lt.s32.totalorder %s47_s20, %s47_s20 }
  0x24   :  { %p2342_p1 = scmp.ne.s32.totalorder %s47_s20, %s2341_s4  ;;  %p2347_p3 = scmp.lt.s32.totalorder %s2341_s4, %s2341_s4 }
  0x26   :  { %p2348_p4 = por %p2347_p3, %p2346_p2 }
  0x28   :  { %p2349_p5 = pnand %p2348_p4, %p2342_p1 }
  0x2a   :  { %2352 = shalt.err (!%p2349_p5)
}
  0x2b   :  { %52 = dma.hbm_to_vmem [thread:$0]  %s2537_s2, 1024, %s47_s20, [#allocation8], %s2403_s10, %s2403_s10, %s2404_s11  }
  0x2c   :  { %s2407_s25 = smov [#allocation12]  }
  0x2d   :  { %s74_s26 = sshll.u32 %s2407_s25, 4  ;;  %s75_s26 = int_to_ptr.vmem [resolvable:$true] %s74_s26 }
  0x2e   :  { %s2361_s27 = scalar_lea.vmem %s75_s26, 1024  ;;  %p2366_p7 = scmp.lt.s32.totalorder %s75_s26, %s75_s26 }
  0x2f   :  { %p2362_p6 = scmp.ne.s32.totalorder %s75_s26, %s2361_s27  ;;  %p2367_p8 = scmp.lt.s32.totalorder %s2361_s27, %s2361_s27 }
  0x31   :  { %p2368_p9 = por %p2367_p8, %p2366_p7 }
  0x33   :  { %p2369_p10 = pnand %p2368_p9, %p2362_p6 }
  0x35   :  { %2372 = shalt.err (!%p2369_p10)
}
  0x36   :  { %80 = dma.hbm_to_vmem [thread:$0]  %s2541_s6, 1024, %s75_s26, [#allocation11], %s2403_s10, %s2403_s10, %s2404_s11  }
  0x37   :  { %2393 = dma.done.wait [#allocation5], 1024  }
  0x38   :  { %2394 = vsyncadd [#allocation5], 4294966272 }
  0x39   :  { %2395 = dma.done.wait [#allocation8], 2048  }
  0x3a   :  { %2396 = vsyncadd [#allocation8], 4294965248 }
  0x3b   :  { %2397 = dma.done.wait [#allocation11], 2048  }
  0x3c   :  { %2398 = vsyncadd [#allocation11], 4294965248  ;;  %v2201_v0 = vld [vmem:[#allocation9 + $0x38] sm:$0xff]   ;;  %v2202_v1 = vld [vmem:[#allocation9 + $0x30] sm:$0xff]  }
  0x3d   :  { %2001 = vmatprep.subr.bf16.mxu0 %v2201_v0  ;;  %v2203_v2 = vld [vmem:[#allocation9 + $0x28] sm:$0xff]   ;;  %v2204_v3 = vld [vmem:[#allocation9 + $0x20] sm:$0xff]   ;;  %v2205_v5 = vld [vmem:[#allocation9 + $0x18] sm:$0xff]  }
  0x3e   :  { %2002 = vmatpush3.bf16.msra.mxu0 %v2201_v0  ;;  %v2209_v4 = vld [vmem:[#allocation7] sm:$0xff]   ;;  %v2206_v6 = vld [vmem:[#allocation9 + $0x10] sm:$0xff]   ;;  %v2207_v7 = vld [vmem:[#allocation9 + $0x8] sm:$0xff]  }
  0x3f   :  { %2003 = vmatprep.subr.bf16.mxu0 %v2202_v1  ;;  %2017 = vmatprep.mubr.bf16.mxu0 %v2209_v4  ;;  %v2208_v8 = vld [vmem:[#allocation9] sm:$0xff]   ;;  %v2210_v9 = vld [vmem:[#allocation7 + $0x8] sm:$0xff]   ;;  %v2211_v10 = vld [vmem:[#allocation7 + $0x10] sm:$0xff]  }
  0x40   :  { %v2212_v11 = vld [vmem:[#allocation7 + $0x18] sm:$0xff]   ;;  %v2213_v12 = vld [vmem:[#allocation7 + $0x20] sm:$0xff]   ;;  %v2214_v13 = vld [vmem:[#allocation7 + $0x28] sm:$0xff]  }
  0x41   :  { %v2215_v14 = vld [vmem:[#allocation7 + $0x30] sm:$0xff]   ;;  %v2216_v15 = vld [vmem:[#allocation7 + $0x38] sm:$0xff]   ;;  %v2217_v16 = vld [vmem:[#allocation4] sm:$0xff]  }
  0x42   :  { %2004 = vmatpush3.bf16.msra.mxu0 %v2202_v1  ;;  %2049 = vmatprep.mubr.bf16.mxu1 %v2217_v16  ;;  %v2225_v17 = vld [vmem:[#allocation10 + $0x38] sm:$0xff]   ;;  %v2226_v18 = vld [vmem:[#allocation10 + $0x30] sm:$0xff]   ;;  %v2218_v43 = vld [vmem:[#allocation4 + $0x8] sm:$0xff]  }
  0x43   :  { %2005 = vmatprep.subr.bf16.mxu0 %v2203_v2  ;;  %v2219_v44 = vld [vmem:[#allocation4 + $0x10] sm:$0xff]   ;;  %v2220_v45 = vld [vmem:[#allocation4 + $0x18] sm:$0xff]   ;;  %v2221_v46 = vld [vmem:[#allocation4 + $0x20] sm:$0xff]  }
  0x44   :  { %v2222_v47 = vld [vmem:[#allocation4 + $0x28] sm:$0xff]   ;;  %v2223_v48 = vld [vmem:[#allocation4 + $0x30] sm:$0xff]   ;;  %v2224_v49 = vld [vmem:[#allocation4 + $0x38] sm:$0xff]  }
  0x45   :  { %v2227_v50 = vld [vmem:[#allocation10 + $0x28] sm:$0xff]   ;;  %v2228_v51 = vld [vmem:[#allocation10 + $0x20] sm:$0xff]   ;;  %v2229_v52 = vld [vmem:[#allocation10 + $0x18] sm:$0xff]  }
  0x46   :  { %2006 = vmatpush3.bf16.msra.mxu0 %v2203_v2  ;;  %v2230_v53 = vld [vmem:[#allocation10 + $0x10] sm:$0xff]   ;;  %v2231_v54 = vld [vmem:[#allocation10 + $0x8] sm:$0xff]   ;;  %v2232_v55 = vld [vmem:[#allocation10] sm:$0xff]  }
  0x47   :  { %2007 = vmatprep.subr.bf16.mxu0 %v2204_v3  ;;  %v2487_v57 = vld [vmem:[%s2538_s3] ss:$0 sm:$0xff] }
  0x4a   :  { %2008 = vmatpush3.bf16.msra.mxu0 %v2204_v3 }
  0x4b   :  { %2009 = vmatprep.subr.bf16.mxu0 %v2205_v5 }
  0x4e   :  { %2010 = vmatpush3.bf16.msra.mxu0 %v2205_v5 }
  0x4f   :  { %2011 = vmatprep.subr.bf16.mxu0 %v2206_v6 }
  0x52   :  { %2012 = vmatpush3.bf16.msra.mxu0 %v2206_v6 }
  0x53   :  { %2013 = vmatprep.subr.bf16.mxu0 %v2207_v7 }
  0x56   :  { %2014 = vmatpush3.bf16.msra.mxu0 %v2207_v7 }
  0x57   :  { %2015 = vmatprep.subr.bf16.mxu0 %v2208_v8 }
  0x5a   :  { %2016 = vmatpush3.bf16.msra.mxu0 %v2208_v8 }
  0x5b   :  { %2065 = vmatprep.subr.bf16.mxu0 %v2225_v17 }
  0x5d   :  { %2018 = vmatmul.mubr.bf16.vlgmr.msra.gmra.mxu0 %v2210_v9 }
  0x5e   :  { %2021 = vmatprep.mubr.bf16.mxu0 %v2211_v10  ;;  %2066 = vmatpush3.bf16.msra.mxu0 %v2225_v17 }
  0x5f   :  { %2067 = vmatprep.subr.bf16.mxu0 %v2226_v18 }
  0x62   :  { %2068 = vmatpush3.bf16.msra.mxu0 %v2226_v18 }
  0x63   :  { %2069 = vmatprep.subr.bf16.mxu0 %v2227_v50 }
  0x65   :  { %2022 = vmatmul.mubr.bf16.gmra.mxu0 %v2212_v11 }
  0x66   :  { %2025 = vmatprep.mubr.bf16.mxu0 %v2213_v12  ;;  %2070 = vmatpush3.bf16.msra.mxu0 %v2227_v50 }
  0x67   :  { %2071 = vmatprep.subr.bf16.mxu0 %v2228_v51 }
  0x6a   :  { %2072 = vmatpush3.bf16.msra.mxu0 %v2228_v51 }
  0x6b   :  { %2073 = vmatprep.subr.bf16.mxu0 %v2229_v52 }
  0x6d   :  { %2026 = vmatmul.mubr.bf16.gmra.mxu0 %v2214_v13 }
  0x6e   :  { %2029 = vmatprep.mubr.bf16.mxu0 %v2215_v14  ;;  %2074 = vmatpush3.bf16.msra.mxu0 %v2229_v52 }
  0x6f   :  { %2075 = vmatprep.subr.bf16.mxu0 %v2230_v53 }
  0x72   :  { %2076 = vmatpush3.bf16.msra.mxu0 %v2230_v53 }
  0x73   :  { %2077 = vmatprep.subr.bf16.mxu0 %v2231_v54 }
  0x75   :  { %2030 = vmatmul.mubr.bf16.gmra.mxu0 %v2216_v15 }
  0x76   :  { %2078 = vmatpush3.bf16.msra.mxu0 %v2231_v54 }
  0x77   :  { %2079 = vmatprep.subr.bf16.mxu0 %v2232_v55 }
  0x7a   :  { %2080 = vmatpush3.bf16.msra.mxu0 %v2232_v55 }
 0x11d   :  { %v2019_v19 = vpop.f32.mrf.mxu0 }
 0x11f   :  { %v262_v20 = vpop.f32.mrf.mxu0 }
 0x121   :  { %v2020_v21 = vpop.f32.mrf.mxu0 }
 0x122   :  { %v326_v41 = vpack.c.bf16 %v2020_v21, %v2019_v19 }
 0x123   :  { %v265_v22 = vpop.f32.mrf.mxu0 }
 0x124   :  { %v325_v42 = vpack.c.bf16 %v265_v22, %v262_v20 }
 0x125   :  { %v2023_v23 = vpop.f32.mrf.mxu0 }
 0x127   :  { %v278_v24 = vpop.f32.mrf.mxu0 }
 0x129   :  { %v2024_v25 = vpop.f32.mrf.mxu0 }
 0x12a   :  { %v328_v39 = vpack.c.bf16 %v2024_v25, %v2023_v23 }
 0x12b   :  { %v281_v26 = vpop.f32.mrf.mxu0 }
 0x12c   :  { %v327_v40 = vpack.c.bf16 %v281_v26, %v278_v24 }
 0x12d   :  { %v2027_v27 = vpop.f32.mrf.mxu0 }
 0x12f   :  { %v294_v28 = vpop.f32.mrf.mxu0 }
 0x131   :  { %v2028_v29 = vpop.f32.mrf.mxu0 }
 0x132   :  { %v330_v37 = vpack.c.bf16 %v2028_v29, %v2027_v27 }
 0x133   :  { %v297_v30 = vpop.f32.mrf.mxu0 }
 0x134   :  { %v329_v38 = vpack.c.bf16 %v297_v30, %v294_v28 }
 0x135   :  { %v2031_v31 = vpop.f32.mrf.mxu0 }
 0x137   :  { %v310_v32 = vpop.f32.mrf.mxu0 }
 0x139   :  { %v2032_v33 = vpop.f32.mrf.mxu0 }
 0x13a   :  { %v332_v34 = vpack.c.bf16 %v2032_v33, %v2031_v31 }
 0x13b   :  { %v313_v35 = vpop.f32.mrf.mxu0 }
 0x13c   :  { %v331_v36 = vpack.c.bf16 %v313_v35, %v310_v32  ;;  %2033 = vmatprep.subr.bf16.mxu1 %v332_v34 }
 0x13d   :  { %2034 = vmatpush3.bf16.msra.mxu1 %v332_v34 }
 0x13e   :  { %2035 = vmatprep.subr.bf16.mxu1 %v331_v36 }
 0x141   :  { %2036 = vmatpush3.bf16.msra.mxu1 %v331_v36 }
 0x142   :  { %2037 = vmatprep.subr.bf16.mxu1 %v330_v37 }
 0x145   :  { %2038 = vmatpush3.bf16.msra.mxu1 %v330_v37 }
 0x146   :  { %2039 = vmatprep.subr.bf16.mxu1 %v329_v38 }
 0x149   :  { %2040 = vmatpush3.bf16.msra.mxu1 %v329_v38 }
 0x14a   :  { %2041 = vmatprep.subr.bf16.mxu1 %v328_v39 }
 0x14d   :  { %2042 = vmatpush3.bf16.msra.mxu1 %v328_v39 }
 0x14e   :  { %2043 = vmatprep.subr.bf16.mxu1 %v327_v40 }
 0x151   :  { %2044 = vmatpush3.bf16.msra.mxu1 %v327_v40 }
 0x152   :  { %2045 = vmatprep.subr.bf16.mxu1 %v326_v41 }
 0x155   :  { %2046 = vmatpush3.bf16.msra.mxu1 %v326_v41 }
 0x156   :  { %2047 = vmatprep.subr.bf16.mxu1 %v325_v42 }
 0x159   :  { %2048 = vmatpush3.bf16.msra.mxu1 %v325_v42 }
 0x15c   :  { %2050 = vmatmul.mubr.bf16.vlgmr.msra.gmra.mxu1 %v2218_v43 }
 0x15d   :  { %2053 = vmatprep.mubr.bf16.mxu1 %v2219_v44 }
 0x164   :  { %2054 = vmatmul.mubr.bf16.gmra.mxu1 %v2220_v45 }
 0x165   :  { %2057 = vmatprep.mubr.bf16.mxu1 %v2221_v46 }
 0x16c   :  { %2058 = vmatmul.mubr.bf16.gmra.mxu1 %v2222_v47 }
 0x16d   :  { %2061 = vmatprep.mubr.bf16.mxu1 %v2223_v48 }
 0x174   :  { %2062 = vmatmul.mubr.bf16.gmra.mxu1 %v2224_v49 }
 0x21c   :  { %v2051_v56 = vpop.f32.mrf.mxu1 }
 0x21d   :  { %v446_v59 = vadd.f32 %v2051_v56, %v2487_v57 }
 0x21e   :  { %v437_v58 = vpop.f32.mrf.mxu1 }
 0x21f   :  { %v438_v61 = vadd.f32 %v2487_v57, %v437_v58  ;;  %v502_v0 = vmax.f32 %v446_v59, 0.0  ;;  %v2241_v58 = vld [vmem:[#allocation4] sm:$0xff]   ;;  %v2249_v59 = vld [vmem:[#allocation12 + $0x38] sm:$0xff]  }
 0x220   :  { %v2052_v60 = vpop.f32.mrf.mxu1  ;;  %2113 = vmatprep.mubr.bf16.mxu1 %v2241_v58  ;;  %2129 = vmatprep.subr.bf16.mxu0 %v2249_v59 }
 0x221   :  { %v449_v62 = vadd.f32 %v2052_v60, %v2487_v57  ;;  %v500_v4 = vmax.f32 %v438_v61, 0.0  ;;  %v2250_v60 = vld [vmem:[#allocation12 + $0x30] sm:$0xff]  }
 0x222   :  { %v440_v63 = vpop.f32.mrf.mxu1 }
 0x223   :  { %v503_v1 = vmax.f32 %v449_v62, 0.0  ;;  %v441_v2 = vadd.f32 %v2487_v57, %v440_v63 }
 0x224   :  { %v2055_v3 = vpop.f32.mrf.mxu1 }
 0x225   :  { %v1772_v5 = vpack.c.bf16 %v503_v1, %v502_v0  ;;  %v501_v6 = vmax.f32 %v441_v2, 0.0  ;;  %v462_v9 = vadd.f32 %v2055_v3, %v2487_v57 }
 0x226   :  { %v453_v7 = vpop.f32.mrf.mxu1 }
 0x227   :  { %1884 = vst [vmem:[#allocation2 + $0x8] sm:$0xff] %v1772_v5   ;;  %v1767_v8 = vpack.c.bf16 %v501_v6, %v500_v4  ;;  %v454_v11 = vadd.f32 %v2487_v57, %v453_v7  ;;  %v506_v14 = vmax.f32 %v462_v9, 0.0 }
 0x228   :  { %v2056_v10 = vpop.f32.mrf.mxu1 }
 0x229   :  { %1768 = vst [vmem:[#allocation2] sm:$0xff] %v1767_v8   ;;  %v465_v12 = vadd.f32 %v2056_v10, %v2487_v57  ;;  %v504_v18 = vmax.f32 %v454_v11, 0.0 }
 0x22a   :  { %v456_v13 = vpop.f32.mrf.mxu1 }
 0x22b   :  { %v507_v15 = vmax.f32 %v465_v12, 0.0  ;;  %v457_v16 = vadd.f32 %v2487_v57, %v456_v13 }
 0x22c   :  { %v2059_v17 = vpop.f32.mrf.mxu1 }
 0x22d   :  { %v1782_v19 = vpack.c.bf16 %v507_v15, %v506_v14  ;;  %v505_v20 = vmax.f32 %v457_v16, 0.0  ;;  %v478_v23 = vadd.f32 %v2059_v17, %v2487_v57 }
 0x22e   :  { %v469_v21 = vpop.f32.mrf.mxu1  ;;  %v2234_v28 = vld [vmem:[#allocation2 + $0x8] sm:$0xff]  }
 0x22f   :  { %1886 = vst [vmem:[#allocation2 + $0x18] sm:$0xff] %v1782_v19   ;;  %v1777_v22 = vpack.c.bf16 %v505_v20, %v504_v18  ;;  %v470_v26 = vadd.f32 %v2487_v57, %v469_v21  ;;  %v510_v30 = vmax.f32 %v478_v23, 0.0  ;;  %v2242_v20 = vld [vmem:[#allocation4 + $0x8] sm:$0xff]   ;;  %v2243_v21 = vld [vmem:[#allocation4 + $0x10] sm:$0xff]   ;;  %v2245_v23 = vld [vmem:[#allocation4 + $0x20] sm:$0xff]  }
 0x230   :  { %v2060_v24 = vpop.f32.mrf.mxu1  ;;  %v2233_v25 = vld [vmem:[#allocation2] sm:$0xff]  }
 0x231   :  { %1885 = vst [vmem:[#allocation2 + $0x10] sm:$0xff] %v1777_v22   ;;  %v481_v27 = vadd.f32 %v2060_v24, %v2487_v57  ;;  %2081 = vmatprep.mubr.bf16.mxu0 %v2233_v25  ;;  %v508_v34 = vmax.f32 %v470_v26, 0.0  ;;  %v2244_v22 = vld [vmem:[#allocation4 + $0x18] sm:$0xff]   ;;  %v2246_v24 = vld [vmem:[#allocation4 + $0x28] sm:$0xff]   ;;  %v2247_v25 = vld [vmem:[#allocation4 + $0x30] sm:$0xff]  }
 0x232   :  { %v472_v29 = vpop.f32.mrf.mxu1  ;;  %2082 = vmatmul.mubr.bf16.vlgmr.msra.gmra.mxu0 %v2234_v28  ;;  %v2248_v26 = vld [vmem:[#allocation4 + $0x38] sm:$0xff]   ;;  %v2252_v28 = vld [vmem:[#allocation12 + $0x20] sm:$0xff]  }
 0x233   :  { %v511_v31 = vmax.f32 %v481_v27, 0.0  ;;  %v473_v32 = vadd.f32 %v2487_v57, %v472_v29  ;;  %2130 = vmatpush3.bf16.msra.mxu0 %v2249_v59  ;;  %v2251_v27 = vld [vmem:[#allocation12 + $0x28] sm:$0xff]   ;;  %v2253_v29 = vld [vmem:[#allocation12 + $0x18] sm:$0xff]  }
 0x234   :  { %v2063_v33 = vpop.f32.mrf.mxu1  ;;  %2131 = vmatprep.subr.bf16.mxu0 %v2250_v60 }
 0x235   :  { %v1792_v35 = vpack.c.bf16 %v511_v31, %v510_v30  ;;  %v509_v36 = vmax.f32 %v473_v32, 0.0  ;;  %v494_v39 = vadd.f32 %v2063_v33, %v2487_v57  ;;  %v2254_v30 = vld [vmem:[#allocation12 + $0x10] sm:$0xff]   ;;  %v2255_v31 = vld [vmem:[#allocation12 + $0x8] sm:$0xff]   ;;  %v2256_v32 = vld [vmem:[#allocation12] sm:$0xff]  }
 0x236   :  { %v485_v37 = vpop.f32.mrf.mxu1  ;;  %v2236_v44 = vld [vmem:[#allocation2 + $0x18] sm:$0xff]  }
 0x237   :  { %1888 = vst [vmem:[#allocation2 + $0x28] sm:$0xff] %v1792_v35   ;;  %v1787_v38 = vpack.c.bf16 %v509_v36, %v508_v34  ;;  %v486_v42 = vadd.f32 %v2487_v57, %v485_v37  ;;  %v514_v46 = vmax.f32 %v494_v39, 0.0  ;;  %2132 = vmatpush3.bf16.msra.mxu0 %v2250_v60  ;;  %v2508_v34 = vld [vmem:[%s2540_s5] ss:$0 sm:$0xff] }
 0x238   :  { %v2064_v40 = vpop.f32.mrf.mxu1  ;;  %v2235_v41 = vld [vmem:[#allocation2 + $0x10] sm:$0xff]   ;;  %2133 = vmatprep.subr.bf16.mxu0 %v2251_v27 }
 0x239   :  { %1887 = vst [vmem:[#allocation2 + $0x20] sm:$0xff] %v1787_v38   ;;  %v497_v43 = vadd.f32 %v2064_v40, %v2487_v57  ;;  %2085 = vmatprep.mubr.bf16.mxu0 %v2235_v41  ;;  %v512_v49 = vmax.f32 %v486_v42, 0.0 }
 0x23a   :  { %v488_v45 = vpop.f32.mrf.mxu1  ;;  %2086 = vmatmul.mubr.bf16.gmra.mxu0 %v2236_v44 }
 0x23b   :  { %v515_v47 = vmax.f32 %v497_v43, 0.0  ;;  %v489_v48 = vadd.f32 %v2487_v57, %v488_v45  ;;  %2134 = vmatpush3.bf16.msra.mxu0 %v2251_v27 }
 0x23c   :  { %2135 = vmatprep.subr.bf16.mxu0 %v2252_v28 }
 0x23d   :  { %v1802_v50 = vpack.c.bf16 %v515_v47, %v514_v46  ;;  %v513_v51 = vmax.f32 %v489_v48, 0.0 }
 0x23e   :  { %v2238_v54 = vld [vmem:[#allocation2 + $0x28] sm:$0xff]  }
 0x23f   :  { %1890 = vst [vmem:[#allocation2 + $0x38] sm:$0xff] %v1802_v50   ;;  %v1797_v52 = vpack.c.bf16 %v513_v51, %v512_v49  ;;  %2136 = vmatpush3.bf16.msra.mxu0 %v2252_v28 }
 0x240   :  { %v2237_v53 = vld [vmem:[#allocation2 + $0x20] sm:$0xff]   ;;  %2137 = vmatprep.subr.bf16.mxu0 %v2253_v29 }
 0x241   :  { %1889 = vst [vmem:[#allocation2 + $0x30] sm:$0xff] %v1797_v52   ;;  %2089 = vmatprep.mubr.bf16.mxu0 %v2237_v53 }
 0x242   :  { %2090 = vmatmul.mubr.bf16.gmra.mxu0 %v2238_v54 }
 0x243   :  { %2138 = vmatpush3.bf16.msra.mxu0 %v2253_v29 }
 0x244   :  { %2139 = vmatprep.subr.bf16.mxu0 %v2254_v30 }
 0x246   :  { %v2240_v56 = vld [vmem:[#allocation2 + $0x38] sm:$0xff]  }
 0x247   :  { %2140 = vmatpush3.bf16.msra.mxu0 %v2254_v30 }
 0x248   :  { %v2239_v55 = vld [vmem:[#allocation2 + $0x30] sm:$0xff]   ;;  %2141 = vmatprep.subr.bf16.mxu0 %v2255_v31 }
 0x249   :  { %2093 = vmatprep.mubr.bf16.mxu0 %v2239_v55 }
 0x24a   :  { %2094 = vmatmul.mubr.bf16.gmra.mxu0 %v2240_v56 }
 0x24b   :  { %2142 = vmatpush3.bf16.msra.mxu0 %v2255_v31 }
 0x24c   :  { %2143 = vmatprep.subr.bf16.mxu0 %v2256_v32 }
 0x24f   :  { %2144 = vmatpush3.bf16.msra.mxu0 %v2256_v32 }
 0x2f2   :  { %v2083_v57 = vpop.f32.mrf.mxu0 }
 0x2f4   :  { %v759_v61 = vpop.f32.mrf.mxu0 }
 0x2f6   :  { %v2084_v62 = vpop.f32.mrf.mxu0 }
 0x2f7   :  { %v823_v18 = vpack.c.bf16 %v2084_v62, %v2083_v57 }
 0x2f8   :  { %v762_v63 = vpop.f32.mrf.mxu0 }
 0x2f9   :  { %v822_v19 = vpack.c.bf16 %v762_v63, %v759_v61 }
 0x2fa   :  { %v2087_v0 = vpop.f32.mrf.mxu0 }
 0x2fc   :  { %v775_v1 = vpop.f32.mrf.mxu0 }
 0x2fe   :  { %v2088_v2 = vpop.f32.mrf.mxu0 }
 0x2ff   :  { %v825_v16 = vpack.c.bf16 %v2088_v2, %v2087_v0 }
 0x300   :  { %v778_v3 = vpop.f32.mrf.mxu0 }
 0x301   :  { %v824_v17 = vpack.c.bf16 %v778_v3, %v775_v1 }
 0x302   :  { %v2091_v4 = vpop.f32.mrf.mxu0 }
 0x304   :  { %v791_v5 = vpop.f32.mrf.mxu0 }
 0x306   :  { %v2092_v6 = vpop.f32.mrf.mxu0 }
 0x307   :  { %v827_v14 = vpack.c.bf16 %v2092_v6, %v2091_v4 }
 0x308   :  { %v794_v7 = vpop.f32.mrf.mxu0 }
 0x309   :  { %v826_v15 = vpack.c.bf16 %v794_v7, %v791_v5 }
 0x30a   :  { %v2095_v8 = vpop.f32.mrf.mxu0 }
 0x30c   :  { %v807_v9 = vpop.f32.mrf.mxu0 }
 0x30e   :  { %v2096_v10 = vpop.f32.mrf.mxu0 }
 0x30f   :  { %v829_v11 = vpack.c.bf16 %v2096_v10, %v2095_v8 }
 0x310   :  { %v810_v12 = vpop.f32.mrf.mxu0 }
 0x311   :  { %v828_v13 = vpack.c.bf16 %v810_v12, %v807_v9  ;;  %2097 = vmatprep.subr.bf16.mxu1 %v829_v11 }
 0x312   :  { %2098 = vmatpush3.bf16.msra.mxu1 %v829_v11 }
 0x313   :  { %2099 = vmatprep.subr.bf16.mxu1 %v828_v13 }
 0x316   :  { %2100 = vmatpush3.bf16.msra.mxu1 %v828_v13 }
 0x317   :  { %2101 = vmatprep.subr.bf16.mxu1 %v827_v14 }
 0x31a   :  { %2102 = vmatpush3.bf16.msra.mxu1 %v827_v14 }
 0x31b   :  { %2103 = vmatprep.subr.bf16.mxu1 %v826_v15 }
 0x31e   :  { %2104 = vmatpush3.bf16.msra.mxu1 %v826_v15 }
 0x31f   :  { %2105 = vmatprep.subr.bf16.mxu1 %v825_v16 }
 0x322   :  { %2106 = vmatpush3.bf16.msra.mxu1 %v825_v16 }
 0x323   :  { %2107 = vmatprep.subr.bf16.mxu1 %v824_v17 }
 0x326   :  { %2108 = vmatpush3.bf16.msra.mxu1 %v824_v17 }
 0x327   :  { %2109 = vmatprep.subr.bf16.mxu1 %v823_v18 }
 0x32a   :  { %2110 = vmatpush3.bf16.msra.mxu1 %v823_v18 }
 0x32b   :  { %2111 = vmatprep.subr.bf16.mxu1 %v822_v19 }
 0x32e   :  { %2112 = vmatpush3.bf16.msra.mxu1 %v822_v19 }
 0x331   :  { %2114 = vmatmul.mubr.bf16.vlgmr.msra.gmra.mxu1 %v2242_v20 }
 0x332   :  { %2117 = vmatprep.mubr.bf16.mxu1 %v2243_v21 }
 0x339   :  { %2118 = vmatmul.mubr.bf16.gmra.mxu1 %v2244_v22 }
 0x33a   :  { %2121 = vmatprep.mubr.bf16.mxu1 %v2245_v23 }
 0x341   :  { %2122 = vmatmul.mubr.bf16.gmra.mxu1 %v2246_v24 }
 0x342   :  { %2125 = vmatprep.mubr.bf16.mxu1 %v2247_v25 }
 0x349   :  { %2126 = vmatmul.mubr.bf16.gmra.mxu1 %v2248_v26 }
 0x3f1   :  { %v2115_v33 = vpop.f32.mrf.mxu1 }
 0x3f2   :  { %v943_v36 = vadd.f32 %v2115_v33, %v2508_v34 }
 0x3f3   :  { %v934_v35 = vpop.f32.mrf.mxu1 }
 0x3f4   :  { %v935_v38 = vadd.f32 %v2508_v34, %v934_v35  ;;  %v999_v41 = vmax.f32 %v943_v36, 0.0  ;;  %v2265_v35 = vld [vmem:[#allocation4] sm:$0xff]  }
 0x3f5   :  { %v2116_v37 = vpop.f32.mrf.mxu1  ;;  %2177 = vmatprep.mubr.bf16.mxu1 %v2265_v35 }
 0x3f6   :  { %v946_v39 = vadd.f32 %v2116_v37, %v2508_v34  ;;  %v997_v45 = vmax.f32 %v935_v38, 0.0 }
 0x3f7   :  { %v937_v40 = vpop.f32.mrf.mxu1 }
 0x3f8   :  { %v1000_v42 = vmax.f32 %v946_v39, 0.0  ;;  %v938_v43 = vadd.f32 %v2508_v34, %v937_v40 }
 0x3f9   :  { %v2119_v44 = vpop.f32.mrf.mxu1 }
 0x3fa   :  { %v1812_v46 = vpack.c.bf16 %v1000_v42, %v999_v41  ;;  %v998_v47 = vmax.f32 %v938_v43, 0.0  ;;  %v959_v50 = vadd.f32 %v2119_v44, %v2508_v34 }
 0x3fb   :  { %v950_v48 = vpop.f32.mrf.mxu1 }
 0x3fc   :  { %1891 = vst [vmem:[#allocation3 + $0x8] sm:$0xff] %v1812_v46   ;;  %v1807_v49 = vpack.c.bf16 %v998_v47, %v997_v45  ;;  %v951_v52 = vadd.f32 %v2508_v34, %v950_v48  ;;  %v1003_v55 = vmax.f32 %v959_v50, 0.0 }
 0x3fd   :  { %v2120_v51 = vpop.f32.mrf.mxu1 }
 0x3fe   :  { %1808 = vst [vmem:[#allocation3] sm:$0xff] %v1807_v49   ;;  %v962_v53 = vadd.f32 %v2120_v51, %v2508_v34  ;;  %v1001_v60 = vmax.f32 %v951_v52, 0.0 }
 0x3ff   :  { %v953_v54 = vpop.f32.mrf.mxu1 }
 0x400   :  { %v1004_v56 = vmax.f32 %v962_v53, 0.0  ;;  %v954_v58 = vadd.f32 %v2508_v34, %v953_v54 }
 0x401   :  { %v2123_v59 = vpop.f32.mrf.mxu1 }
 0x402   :  { %v1822_v57 = vpack.c.bf16 %v1004_v56, %v1003_v55  ;;  %v1002_v61 = vmax.f32 %v954_v58, 0.0  ;;  %v975_v0 = vadd.f32 %v2123_v59, %v2508_v34 }
 0x403   :  { %v966_v62 = vpop.f32.mrf.mxu1  ;;  %v2258_v5 = vld [vmem:[#allocation3 + $0x8] sm:$0xff]  }
 0x404   :  { %1893 = vst [vmem:[#allocation3 + $0x18] sm:$0xff] %v1822_v57   ;;  %v1817_v63 = vpack.c.bf16 %v1002_v61, %v1001_v60  ;;  %v967_v3 = vadd.f32 %v2508_v34, %v966_v62  ;;  %v1007_v7 = vmax.f32 %v975_v0, 0.0  ;;  %v2266_v60 = vld [vmem:[#allocation4 + $0x8] sm:$0xff]   ;;  %v2267_v57 = vld [vmem:[#allocation4 + $0x10] sm:$0xff]   ;;  %v2268_v61 = vld [vmem:[#allocation4 + $0x18] sm:$0xff]  }
 0x405   :  { %v2124_v1 = vpop.f32.mrf.mxu1  ;;  %v2257_v2 = vld [vmem:[#allocation3] sm:$0xff]   ;;  %v2271_v0 = vld [vmem:[#allocation4 + $0x30] sm:$0xff]  }
 0x406   :  { %1892 = vst [vmem:[#allocation3 + $0x10] sm:$0xff] %v1817_v63   ;;  %v978_v4 = vadd.f32 %v2124_v1, %v2508_v34  ;;  %2145 = vmatprep.mubr.bf16.mxu0 %v2257_v2  ;;  %v1005_v11 = vmax.f32 %v967_v3, 0.0  ;;  %v2269_v62 = vld [vmem:[#allocation4 + $0x20] sm:$0xff]   ;;  %v2270_v63 = vld [vmem:[#allocation4 + $0x28] sm:$0xff]   ;;  %v2272_v1 = vld [vmem:[#allocation4 + $0x38] sm:$0xff]  }
 0x407   :  { %v969_v6 = vpop.f32.mrf.mxu1  ;;  %2146 = vmatmul.mubr.bf16.vlgmr.msra.gmra.mxu0 %v2258_v5  ;;  %v1691_v3 = vld [vmem:[%s2542_s7] ss:$0 sm:$0xff]  ;;  %s2408_s7 = smov [#allocation13]  }
 0x408   :  { %v1008_v8 = vmax.f32 %v978_v4, 0.0  ;;  %v970_v9 = vadd.f32 %v2508_v34, %v969_v6  ;;  %s1579_s9 = sshll.u32 %s2408_s7, 4  ;;  %s1580_s9 = int_to_ptr.vmem [resolvable:$true] %s1579_s9 }
 0x409   :  { %v2127_v10 = vpop.f32.mrf.mxu1  ;;  %s2373_s12 = scalar_lea.vmem %s1580_s9, 1024  ;;  %p2378_p12 = scmp.lt.s32.totalorder %s1580_s9, %s1580_s9 }
 0x40a   :  { %v1832_v12 = vpack.c.bf16 %v1008_v8, %v1007_v7  ;;  %v1006_v13 = vmax.f32 %v970_v9, 0.0  ;;  %v991_v16 = vadd.f32 %v2127_v10, %v2508_v34  ;;  %p2374_p11 = scmp.ne.s32.totalorder %s1580_s9, %s2373_s12  ;;  %p2379_p13 = scmp.lt.s32.totalorder %s2373_s12, %s2373_s12 }
 0x40b   :  { %v982_v14 = vpop.f32.mrf.mxu1  ;;  %v2260_v21 = vld [vmem:[#allocation3 + $0x18] sm:$0xff]  }
 0x40c   :  { %1895 = vst [vmem:[#allocation3 + $0x28] sm:$0xff] %v1832_v12   ;;  %v1827_v15 = vpack.c.bf16 %v1006_v13, %v1005_v11  ;;  %v983_v19 = vadd.f32 %v2508_v34, %v982_v14  ;;  %v1011_v23 = vmax.f32 %v991_v16, 0.0  ;;  %p2380_p0 = por %p2379_p13, %p2378_p12 }
 0x40d   :  { %v2128_v17 = vpop.f32.mrf.mxu1  ;;  %v2259_v18 = vld [vmem:[#allocation3 + $0x10] sm:$0xff]  }
 0x40e   :  { %1894 = vst [vmem:[#allocation3 + $0x20] sm:$0xff] %v1827_v15   ;;  %v994_v20 = vadd.f32 %v2128_v17, %v2508_v34  ;;  %2149 = vmatprep.mubr.bf16.mxu0 %v2259_v18  ;;  %v1009_v26 = vmax.f32 %v983_v19, 0.0  ;;  %p2381_p1 = pnand %p2380_p0, %p2374_p11 }
 0x40f   :  { %v985_v22 = vpop.f32.mrf.mxu1  ;;  %2150 = vmatmul.mubr.bf16.gmra.mxu0 %v2260_v21 }
 0x410   :  { %v1012_v24 = vmax.f32 %v994_v20, 0.0  ;;  %v986_v25 = vadd.f32 %v2508_v34, %v985_v22 }
 0x412   :  { %v1842_v27 = vpack.c.bf16 %v1012_v24, %v1011_v23  ;;  %v1010_v28 = vmax.f32 %v986_v25, 0.0 }
 0x413   :  { %v2262_v31 = vld [vmem:[#allocation3 + $0x28] sm:$0xff]  }
 0x414   :  { %1897 = vst [vmem:[#allocation3 + $0x38] sm:$0xff] %v1842_v27   ;;  %v1837_v29 = vpack.c.bf16 %v1010_v28, %v1009_v26 }
 0x415   :  { %v2261_v30 = vld [vmem:[#allocation3 + $0x20] sm:$0xff]  }
 0x416   :  { %1896 = vst [vmem:[#allocation3 + $0x30] sm:$0xff] %v1837_v29   ;;  %2153 = vmatprep.mubr.bf16.mxu0 %v2261_v30 }
 0x417   :  { %2154 = vmatmul.mubr.bf16.gmra.mxu0 %v2262_v31 }
 0x41b   :  { %v2264_v33 = vld [vmem:[#allocation3 + $0x38] sm:$0xff]  }
 0x41d   :  { %v2263_v32 = vld [vmem:[#allocation3 + $0x30] sm:$0xff]  }
 0x41e   :  { %2157 = vmatprep.mubr.bf16.mxu0 %v2263_v32 }
 0x41f   :  { %2158 = vmatmul.mubr.bf16.gmra.mxu0 %v2264_v33 }
 0x4c7   :  { %v2147_v36 = vpop.f32.mrf.mxu0 }
 0x4c9   :  { %v1256_v37 = vpop.f32.mrf.mxu0 }
 0x4cb   :  { %v2148_v34 = vpop.f32.mrf.mxu0 }
 0x4cc   :  { %v1320_v58 = vpack.c.bf16 %v2148_v34, %v2147_v36 }
 0x4cd   :  { %v1259_v38 = vpop.f32.mrf.mxu0 }
 0x4ce   :  { %v1319_v59 = vpack.c.bf16 %v1259_v38, %v1256_v37 }
 0x4cf   :  { %v2151_v39 = vpop.f32.mrf.mxu0 }
 0x4d1   :  { %v1272_v40 = vpop.f32.mrf.mxu0 }
 0x4d3   :  { %v2152_v41 = vpop.f32.mrf.mxu0 }
 0x4d4   :  { %v1322_v55 = vpack.c.bf16 %v2152_v41, %v2151_v39 }
 0x4d5   :  { %v1275_v42 = vpop.f32.mrf.mxu0 }
 0x4d6   :  { %v1321_v56 = vpack.c.bf16 %v1275_v42, %v1272_v40 }
 0x4d7   :  { %v2155_v43 = vpop.f32.mrf.mxu0 }
 0x4d9   :  { %v1288_v44 = vpop.f32.mrf.mxu0 }
 0x4db   :  { %v2156_v45 = vpop.f32.mrf.mxu0 }
 0x4dc   :  { %v1324_v53 = vpack.c.bf16 %v2156_v45, %v2155_v43 }
 0x4dd   :  { %v1291_v46 = vpop.f32.mrf.mxu0 }
 0x4de   :  { %v1323_v54 = vpack.c.bf16 %v1291_v46, %v1288_v44 }
 0x4df   :  { %v2159_v47 = vpop.f32.mrf.mxu0 }
 0x4e1   :  { %v1304_v48 = vpop.f32.mrf.mxu0 }
 0x4e3   :  { %v2160_v49 = vpop.f32.mrf.mxu0 }
 0x4e4   :  { %v1326_v50 = vpack.c.bf16 %v2160_v49, %v2159_v47 }
 0x4e5   :  { %v1307_v51 = vpop.f32.mrf.mxu0 }
 0x4e6   :  { %v1325_v52 = vpack.c.bf16 %v1307_v51, %v1304_v48  ;;  %2161 = vmatprep.subr.bf16.mxu1 %v1326_v50 }
 0x4e7   :  { %2162 = vmatpush3.bf16.msra.mxu1 %v1326_v50 }
 0x4e8   :  { %2163 = vmatprep.subr.bf16.mxu1 %v1325_v52 }
 0x4eb   :  { %2164 = vmatpush3.bf16.msra.mxu1 %v1325_v52 }
 0x4ec   :  { %2165 = vmatprep.subr.bf16.mxu1 %v1324_v53 }
 0x4ef   :  { %2166 = vmatpush3.bf16.msra.mxu1 %v1324_v53 }
 0x4f0   :  { %2167 = vmatprep.subr.bf16.mxu1 %v1323_v54 }
 0x4f3   :  { %2168 = vmatpush3.bf16.msra.mxu1 %v1323_v54 }
 0x4f4   :  { %2169 = vmatprep.subr.bf16.mxu1 %v1322_v55 }
 0x4f7   :  { %2170 = vmatpush3.bf16.msra.mxu1 %v1322_v55 }
 0x4f8   :  { %2171 = vmatprep.subr.bf16.mxu1 %v1321_v56 }
 0x4fb   :  { %2172 = vmatpush3.bf16.msra.mxu1 %v1321_v56 }
 0x4fc   :  { %2173 = vmatprep.subr.bf16.mxu1 %v1320_v58 }
 0x4ff   :  { %2174 = vmatpush3.bf16.msra.mxu1 %v1320_v58 }
 0x500   :  { %2175 = vmatprep.subr.bf16.mxu1 %v1319_v59 }
 0x503   :  { %2176 = vmatpush3.bf16.msra.mxu1 %v1319_v59 }
 0x506   :  { %2178 = vmatmul.mubr.bf16.vlgmr.msra.gmra.mxu1 %v2266_v60 }
 0x507   :  { %2181 = vmatprep.mubr.bf16.mxu1 %v2267_v57 }
 0x50e   :  { %2182 = vmatmul.mubr.bf16.gmra.mxu1 %v2268_v61 }
 0x50f   :  { %2185 = vmatprep.mubr.bf16.mxu1 %v2269_v62 }
 0x516   :  { %2186 = vmatmul.mubr.bf16.gmra.mxu1 %v2270_v63 }
 0x517   :  { %2189 = vmatprep.mubr.bf16.mxu1 %v2271_v0 }
 0x51e   :  { %2190 = vmatmul.mubr.bf16.gmra.mxu1 %v2272_v1 }
 0x5c6   :  { %v2179_v2 = vpop.f32.mrf.mxu1 }
 0x5c7   :  { %v1440_v6 = vadd.f32 %v2179_v2, %v1691_v3 }
 0x5c8   :  { %v1431_v4 = vpop.f32.mrf.mxu1 }
 0x5c9   :  { %v1432_v9 = vadd.f32 %v1691_v3, %v1431_v4 }
 0x5ca   :  { %v2180_v5 = vpop.f32.mrf.mxu1 }
 0x5cb   :  { %v1443_v7 = vadd.f32 %v2180_v5, %v1691_v3 }
 0x5cc   :  { %v1434_v8 = vpop.f32.mrf.mxu1 }
 0x5cd   :  { %v1852_v10 = vpack.c.bf16 %v1443_v7, %v1440_v6  ;;  %v1435_v11 = vadd.f32 %v1691_v3, %v1434_v8 }
 0x5ce   :  { %v2183_v12 = vpop.f32.mrf.mxu1 }
 0x5cf   :  { %1898 = vst [vmem:[#allocation13 + $0x8] sm:$0xff] %v1852_v10   ;;  %v1847_v13 = vpack.c.bf16 %v1435_v11, %v1432_v9  ;;  %v1456_v16 = vadd.f32 %v2183_v12, %v1691_v3 }
 0x5d0   :  { %v1447_v14 = vpop.f32.mrf.mxu1 }
 0x5d1   :  { %1848 = vst [vmem:[#allocation13] sm:$0xff] %v1847_v13   ;;  %v1448_v19 = vadd.f32 %v1691_v3, %v1447_v14 }
 0x5d2   :  { %v2184_v15 = vpop.f32.mrf.mxu1 }
 0x5d3   :  { %v1459_v17 = vadd.f32 %v2184_v15, %v1691_v3 }
 0x5d4   :  { %v1450_v18 = vpop.f32.mrf.mxu1 }
 0x5d5   :  { %v1862_v20 = vpack.c.bf16 %v1459_v17, %v1456_v16  ;;  %v1451_v21 = vadd.f32 %v1691_v3, %v1450_v18 }
 0x5d6   :  { %v2187_v22 = vpop.f32.mrf.mxu1 }
 0x5d7   :  { %1900 = vst [vmem:[#allocation13 + $0x18] sm:$0xff] %v1862_v20   ;;  %v1857_v23 = vpack.c.bf16 %v1451_v21, %v1448_v19  ;;  %v1472_v26 = vadd.f32 %v2187_v22, %v1691_v3 }
 0x5d8   :  { %v1463_v24 = vpop.f32.mrf.mxu1 }
 0x5d9   :  { %1899 = vst [vmem:[#allocation13 + $0x10] sm:$0xff] %v1857_v23   ;;  %v1464_v29 = vadd.f32 %v1691_v3, %v1463_v24 }
 0x5da   :  { %v2188_v25 = vpop.f32.mrf.mxu1 }
 0x5db   :  { %v1475_v27 = vadd.f32 %v2188_v25, %v1691_v3 }
 0x5dc   :  { %v1466_v28 = vpop.f32.mrf.mxu1 }
 0x5dd   :  { %v1872_v30 = vpack.c.bf16 %v1475_v27, %v1472_v26  ;;  %v1467_v31 = vadd.f32 %v1691_v3, %v1466_v28 }
 0x5de   :  { %v2191_v32 = vpop.f32.mrf.mxu1 }
 0x5df   :  { %1902 = vst [vmem:[#allocation13 + $0x28] sm:$0xff] %v1872_v30   ;;  %v1867_v33 = vpack.c.bf16 %v1467_v31, %v1464_v29  ;;  %v1488_v37 = vadd.f32 %v2191_v32, %v1691_v3 }
 0x5e0   :  { %v1479_v35 = vpop.f32.mrf.mxu1 }
 0x5e1   :  { %1901 = vst [vmem:[#allocation13 + $0x20] sm:$0xff] %v1867_v33   ;;  %v1480_v39 = vadd.f32 %v1691_v3, %v1479_v35 }
 0x5e2   :  { %v2192_v36 = vpop.f32.mrf.mxu1 }
 0x5e3   :  { %v1491_v34 = vadd.f32 %v2192_v36, %v1691_v3 }
 0x5e4   :  { %v1482_v38 = vpop.f32.mrf.mxu1 }
 0x5e5   :  { %v1882_v40 = vpack.c.bf16 %v1491_v34, %v1488_v37  ;;  %v1483_v41 = vadd.f32 %v1691_v3, %v1482_v38 }
 0x5e7   :  { %1904 = vst [vmem:[#allocation13 + $0x38] sm:$0xff] %v1882_v40   ;;  %v1877_v42 = vpack.c.bf16 %v1483_v41, %v1480_v39 }
 0x5e9   :  { %1903 = vst [vmem:[#allocation13 + $0x30] sm:$0xff] %v1877_v42  }
 0x5ea   :  { %2384 = shalt.err (!%p2381_p1)
}
 0x5eb   :  { %1585 = dma.vmem_to_hbm [thread:$0]  %s1580_s9, 1024, %s2543_s8, [#allocation6], %s2403_s10, %s2403_s10, %s2404_s11  }
 0x5ec   :  { %2399 = dma.done.wait [#allocation6], 1024  }
 0x5ed   :  { %2400 = vsyncadd [#allocation6], 4294966272 }
 0x5ee   :  { %1589 = vsyncpa [#allocation5], 1 }
 0x5ef   :  { %1590 = vsyncpa [#allocation8], 1 }
 0x5f0   :  { %1591 = vsyncpa [#allocation11], 1 }
 0x5f1   :  { %1592 = vsyncpa [#allocation6], 1 }

</bundles_post_ra>
